<compile_context>
chip_gen: v5e
topology: v5e:2x2
jax: 0.10.0
libtpu: 0.0.40
codegen_flags: <defaults>
</compile_context>

<pallas_src>
import functools
import math

import jax
import jax.numpy as jnp
from jax.experimental import pallas as pl
from jax.experimental.pallas import tpu as pltpu


# ----------------------------------------------------------------------------
# Kernels
# ----------------------------------------------------------------------------
def _self_attention_kernel(x_ref, wqkv_ref, o_ref, *, dim_attn):
    bb, S, D = x_ref.shape
    a = dim_attn

    # Single MXU matmul for all three projections (scale folded into Wq).
    x2d = x_ref[...].reshape(bb * S, D)                     # sublane-aligned merge
    qkv = jnp.dot(x2d, wqkv_ref[...],
                  preferred_element_type=jnp.float32)       # (bb*S, 2A+D)

    q = qkv[:, :a].reshape(bb, S, a)                        # (bb, S, A)
    k = qkv[:, a:2 * a].reshape(bb, S, a)                   # (bb, S, A)
    v = qkv[:, 2 * a:].reshape(bb, S, D)                    # (bb, S, D)

    # scores = (x Wq / sqrt(A)) K^T ; contract last dims -> K never transposed.
    s = jnp.einsum("bqa,bka->bqk", q, k,
                   preferred_element_type=jnp.float32)      # (bb, S, S)

    # Numerically-stable softmax with deferred normalization.
    m = jnp.max(s, axis=-1, keepdims=True)
    e = jnp.exp(s - m)                                      # (bb, S, S)
    denom = jnp.sum(e, axis=-1, keepdims=True)              # (bb, S, 1)

    o = jnp.einsum("bqk,bkd->bqd", e, v,
                   preferred_element_type=jnp.float32)      # (bb, S, D)
    o_ref[...] = o * pl.reciprocal(denom, approx=True)


def _cross_attention_kernel(x_ref, kv_ref, wq_ref, wkv_ref, o_ref, *, dim_attn):
    bb, Sq, D = x_ref.shape
    Skv = kv_ref.shape[1]
    a = dim_attn

    q = jnp.dot(x_ref[...].reshape(bb * Sq, D), wq_ref[...],
                preferred_element_type=jnp.float32).reshape(bb, Sq, a)
    kvp = jnp.dot(kv_ref[...].reshape(bb * Skv, D), wkv_ref[...],
                  preferred_element_type=jnp.float32)       # (bb*Skv, A+D)
    k = kvp[:, :a].reshape(bb, Skv, a)
    v = kvp[:, a:].reshape(bb, Skv, D)

    s = jnp.einsum("bqa,bka->bqk", q, k,
                   preferred_element_type=jnp.float32)      # (bb, Sq, Skv)
    m = jnp.max(s, axis=-1, keepdims=True)
    e = jnp.exp(s - m)
    denom = jnp.sum(e, axis=-1, keepdims=True)
    o = jnp.einsum("bqk,bkd->bqd", e, v,
                   preferred_element_type=jnp.float32)      # (bb, Sq, D)
    o_ref[...] = o * pl.reciprocal(denom, approx=True)


# ----------------------------------------------------------------------------
# Batch-block sizing: biggest divisor of B whose per-step footprint fits budget.
# ----------------------------------------------------------------------------
def _pick_batch_block(B, Sq, Skv, D, A, budget_bytes=8 * 1024 * 1024):
    per_b = 4 * (2 * Sq * D              # x block (double-buffered)
                 + 2 * Skv * D           # kv block
                 + Sq * (2 * A + D)      # qkv / q
                 + Skv * (A + D)         # k, v
                 + 3 * Sq * Skv          # scores + exp
                 + 3 * Sq * D)           # o accum + out block (double-buffered)
    cap = max(1, budget_bytes // max(per_b, 1))
    for cand in range(min(B, cap), 0, -1):
        if B % cand == 0:
            return cand
    return 1


# ----------------------------------------------------------------------------
# Wrapper (mirrors AttentionBlock.forward)
# ----------------------------------------------------------------------------
def attention_block(x, wq, wk, wv, kv=None):
    """x: (B,S,D) f32; wq/wk: (D,A); wv: (D,D); kv: optional (B,Skv,D)."""
    B, S, D = x.shape
    A = wq.shape[1]
    scale = jnp.float32(1.0 / math.sqrt(A))

    if kv is None:
        # Stack [Wq*scale | Wk | Wv] once at trace time -> one in-kernel matmul.
        wqkv = jnp.concatenate([wq * scale, wk, wv], axis=1)        # (D, 2A+D)
        bb = _pick_batch_block(B, S, S, D, A)
        flops = 2 * B * (S * D * (2 * A + D) + S * S * A + S * S * D)
        bytes_accessed = 4 * (x.size + wqkv.size + B * S * D)
        kernel = functools.partial(_self_attention_kernel, dim_attn=A)
        return pl.pallas_call(
            kernel,
            out_shape=jax.ShapeDtypeStruct((B, S, D), jnp.float32),
            grid_spec=pltpu.PrefetchScalarGridSpec(
                num_scalar_prefetch=0,
                grid=(B // bb,),
                in_specs=[
                    pl.BlockSpec((bb, S, D), lambda b: (b, 0, 0)),       # x
                    pl.BlockSpec((D, 2 * A + D), lambda b: (0, 0)),      # stacked W
                ],
                out_specs=pl.BlockSpec((bb, S, D), lambda b: (b, 0, 0)),
            ),
            compiler_params=pltpu.CompilerParams(
                dimension_semantics=("parallel",)),
            cost_estimate=pl.CostEstimate(
                flops=flops, transcendentals=B * S * S,
                bytes_accessed=bytes_accessed),
        )(x, wqkv)

    # Cross-attention path: K/V computed from `kv`.
    _, Skv, Dkv = kv.shape
    wq_s = wq * scale                                                # (D, A)
    wkv = jnp.concatenate([wk, wv], axis=1)                          # (D, A+D)
    bb = _pick_batch_block(B, S, Skv, D, A)
    flops = 2 * B * (S * D * A + Skv * D * (A + D) + S * Skv * A + S * Skv * D)
    bytes_accessed = 4 * (x.size + kv.size + wq_s.size + wkv.size + B * S * D)
    kernel = functools.partial(_cross_attention_kernel, dim_attn=A)
    return pl.pallas_call(
        kernel,
        out_shape=jax.ShapeDtypeStruct((B, S, D), jnp.float32),
        grid_spec=pltpu.PrefetchScalarGridSpec(
            num_scalar_prefetch=0,
            grid=(B // bb,),
            in_specs=[
                pl.BlockSpec((bb, S, D), lambda b: (b, 0, 0)),           # x
                pl.BlockSpec((bb, Skv, Dkv), lambda b: (b, 0, 0)),       # kv
                pl.BlockSpec((D, A), lambda b: (0, 0)),                  # Wq*scale
                pl.BlockSpec((D, A + D), lambda b: (0, 0)),              # [Wk|Wv]
            ],
            out_specs=pl.BlockSpec((bb, S, D), lambda b: (b, 0, 0)),
        ),
        compiler_params=pltpu.CompilerParams(
            dimension_semantics=("parallel",)),
        cost_estimate=pl.CostEstimate(
            flops=flops, transcendentals=B * S * Skv,
            bytes_accessed=bytes_accessed),
    )(x, kv, wq_s, wkv)


# ----------------------------------------------------------------------------
# Pure-JAX reference (mirrors the PyTorch forward exactly).
# ----------------------------------------------------------------------------
def _reference(x, wq, wk, wv, kv=None):
    src = x if kv is None else kv
    A = wq.shape[1]
    q = x @ wq
    k = src @ wk
    v = src @ wv
    s = jnp.einsum("bsa,bta->bst", q, k) / math.sqrt(A)
    p = jax.nn.softmax(s, axis=-1)
    return jnp.einsum("bst,btd->bsd", p, v)


if __name__ == "__main__":
    # Small, deterministic sizes consistent with the module's forward.
    B, S = 2, 8            # batch, sequence length
    S_kv = 16              # kv sequence length (cross-attention path)
    dim_val = 32           # feature / value dim
    dim_attn = 16          # attention (Q/K) dim

    key = jax.random.PRNGKey(0)
    kx, kq, kk, kv_w, kkv = jax.random.split(key, 5)

    x = jax.random.normal(kx, (B, S, dim_val), dtype=jnp.float32)
    kv_in = jax.random.normal(kkv, (B, S_kv, dim_val), dtype=jnp.float32)

    # Deterministic "Linear(bias=False)" weights, stored pre-transposed (in, out).
    w_scale = 1.0 / math.sqrt(dim_val)
    wq = jax.random.uniform(kq, (dim_val, dim_attn),
                            minval=-w_scale, maxval=w_scale, dtype=jnp.float32)
    wk = jax.random.uniform(kk, (dim_val, dim_attn),
                            minval=-w_scale, maxval=w_scale, dtype=jnp.float32)
    wv = jax.random.uniform(kv_w, (dim_val, dim_val),
                            minval=-w_scale, maxval=w_scale, dtype=jnp.float32)

    # Self-attention path (kv=None).
    out = jax.block_until_ready(attention_block(x, wq, wk, wv))
    ref = _reference(x, wq, wk, wv)
    assert out.shape == (B, S, dim_val)
    # Tolerance covers the EUP approximate reciprocal in the deferred softmax
    # normalization and the folded Q scale (relative error ~1e-4).
    assert jnp.max(jnp.abs(out - ref)) < 2e-3, "self-attention mismatch"

    # Cross-attention path (kv given).
    out_c = jax.block_until_ready(attention_block(x, wq, wk, wv, kv=kv_in))
    ref_c = _reference(x, wq, wk, wv, kv=kv_in)
    assert out_c.shape == (B, S, dim_val)
    assert jnp.max(jnp.abs(out_c - ref_c)) < 2e-3, "cross-attention mismatch"

    print("KERNEL_OK")
</pallas_src>

<mosaic_0001>
module attributes {stable_mosaic.version = 11 : i64} {
  func.func @_self_attention_kernel(%arg0: i32, %arg1: memref<2x8x32xf32, #tpu.memory_space<vmem>>, %arg2: memref<32x64xf32, #tpu.memory_space<vmem>>, %arg3: memref<2x8x32xf32, #tpu.memory_space<vmem>>) attributes {dimension_semantics = [#tpu.dimension_semantics<parallel>], iteration_bounds = array<i64: 1>, scalar_prefetch = 0 : i64, scratch_operands = 0 : i64, tpu.core_type = #tpu.core_type<tc>, window_params = [{transform_indices = @transform_0, window_bounds = array<i64: 2, 8, 32>}, {pipeline_mode = #tpu.pipeline_mode<synchronous>, transform_indices = @transform_1, window_bounds = array<i64: 32, 64>}, {transform_indices = @transform_2, window_bounds = array<i64: 2, 8, 32>}]} {
    %c0 = arith.constant 0 : index
    %c0_0 = arith.constant 0 : index
    %c0_1 = arith.constant 0 : index
    %0 = vector.load %arg1[%c0, %c0_0, %c0_1] : memref<2x8x32xf32, #tpu.memory_space<vmem>>, vector<2x8x32xf32>
    %1 = vector.shape_cast %0 : vector<2x8x32xf32> to vector<16x32xf32>
    %c0_2 = arith.constant 0 : index
    %c0_3 = arith.constant 0 : index
    %2 = vector.load %arg2[%c0_2, %c0_3] : memref<32x64xf32, #tpu.memory_space<vmem>>, vector<32x64xf32>
    %cst = arith.constant dense<0.000000e+00> : vector<16x64xf32>
    %3 = tpu.matmul %1, %2, %cst {dimension_numbers = #tpu.dot_dimension_numbers<[1], [0], [0], [1], [0, 0, 1, 1], [], []>} : vector<16x32xf32>, vector<32x64xf32>, vector<16x64xf32> -> vector<16x64xf32>
    %4 = vector.extract_strided_slice %3 {offsets = [0, 0], sizes = [16, 16], strides = [1, 1]} : vector<16x64xf32> to vector<16x16xf32>
    %5 = vector.shape_cast %4 : vector<16x16xf32> to vector<2x8x16xf32>
    %6 = vector.extract_strided_slice %3 {offsets = [0, 16], sizes = [16, 16], strides = [1, 1]} : vector<16x64xf32> to vector<16x16xf32>
    %7 = vector.shape_cast %6 : vector<16x16xf32> to vector<2x8x16xf32>
    %8 = vector.extract_strided_slice %3 {offsets = [0, 32], sizes = [16, 32], strides = [1, 1]} : vector<16x64xf32> to vector<16x32xf32>
    %9 = vector.shape_cast %8 : vector<16x32xf32> to vector<2x8x32xf32>
    "tpu.trace_start"() <{level = 10 : i32, message = "bqa,bka->bqk"}> : () -> ()
    %cst_4 = arith.constant dense<0.000000e+00> : vector<2x8x8xf32>
    %10 = tpu.matmul %5, %7, %cst_4 {dimension_numbers = #tpu.dot_dimension_numbers<[2], [2], [1], [1], [0, 0, 0, 1, 1, 1], [0], [0]>} : vector<2x8x16xf32>, vector<2x8x16xf32>, vector<2x8x8xf32> -> vector<2x8x8xf32>
    "tpu.trace_stop"() : () -> ()
    %cst_5 = arith.constant dense<0xFF800000> : vector<2x8xf32>
    %11 = vector.multi_reduction <maximumf>, %10, %cst_5 [2] : vector<2x8x8xf32> to vector<2x8xf32>
    %12 = vector.shape_cast %11 : vector<2x8xf32> to vector<2x8x1xf32>
    %13 = vector.broadcast %12 : vector<2x8x1xf32> to vector<2x8x8xf32>
    %14 = arith.subf %10, %13 : vector<2x8x8xf32>
    %15 = math.exp %14 : vector<2x8x8xf32>
    %cst_6 = arith.constant dense<0.000000e+00> : vector<2x8xf32>
    %16 = vector.multi_reduction <add>, %15, %cst_6 [2] : vector<2x8x8xf32> to vector<2x8xf32>
    %17 = vector.shape_cast %16 : vector<2x8xf32> to vector<2x8x1xf32>
    "tpu.trace_start"() <{level = 10 : i32, message = "bqk,bkd->bqd"}> : () -> ()
    %cst_7 = arith.constant dense<0.000000e+00> : vector<2x8x32xf32>
    %18 = tpu.matmul %15, %9, %cst_7 {dimension_numbers = #tpu.dot_dimension_numbers<[2], [1], [1], [2], [0, 0, 0, 1, 1, 2], [0], [0]>} : vector<2x8x8xf32>, vector<2x8x32xf32>, vector<2x8x32xf32> -> vector<2x8x32xf32>
    "tpu.trace_stop"() : () -> ()
    %19 = tpu.reciprocal %17 {approx = true} : vector<2x8x1xf32> -> vector<2x8x1xf32>
    %20 = vector.broadcast %19 : vector<2x8x1xf32> to vector<2x8x32xf32>
    %21 = arith.mulf %18, %20 : vector<2x8x32xf32>
    %c0_8 = arith.constant 0 : index
    %c0_9 = arith.constant 0 : index
    %c0_10 = arith.constant 0 : index
    %22 = vector.load %arg3[%c0_8, %c0_9, %c0_10] : memref<2x8x32xf32, #tpu.memory_space<vmem>>, vector<2x8x32xf32>
    tpu.vector_store %arg3[%c0_8, %c0_9, %c0_10], %21 {strides = array<i32>} : memref<2x8x32xf32, #tpu.memory_space<vmem>>, vector<2x8x32xf32>,
    return
  }
  func.func @transform_0(%arg0: i32) -> (i32, i32, i32) {
    %c0_i32 = arith.constant 0 : i32
    %c0_i32_0 = arith.constant 0 : i32
    %c0_i32_1 = arith.constant 0 : i32
    return %arg0, %c0_i32, %c0_i32_0 : i32, i32, i32
  }
  func.func @transform_1(%arg0: i32) -> (i32, i32) {
    %c0_i32 = arith.constant 0 : i32
    %c0_i32_0 = arith.constant 0 : i32
    %c0_i32_1 = arith.constant 0 : i32
    return %c0_i32, %c0_i32_0 : i32, i32
  }
  func.func @transform_2(%arg0: i32) -> (i32, i32, i32) {
    %c0_i32 = arith.constant 0 : i32
    %c0_i32_0 = arith.constant 0 : i32
    %c0_i32_1 = arith.constant 0 : i32
    return %arg0, %c0_i32, %c0_i32_0 : i32, i32, i32
  }
}

</mosaic_0001>

<bundles_post_ra>
// kernel: tpu_custom_call.1
= control target key start
LH: loop header
LB: loop body
LE: loop exit
PB: predicated region body
PF: predicated region fallthrough
CT: control target
= control target key end

     0   :  { %7 = vsyncpa [#allocation3], 0  ;;  %s383_s0 = inlined_call_operand.hbm [shape: f32[2,8,32], index: 0, kind: input, shape index: {}]   ;;  %s384_s1 = inlined_call_operand.hbm [shape: f32[32,64], index: 1, kind: input, shape index: {}]   ;;  %s385_s2 = inlined_call_operand.hbm [shape: f32[2,8,32], index: 2, kind: output, shape index: {}]  }
   0x1   :  { %8 = vsyncpa [#allocation6], 0 }
   0x2   :  { %9 = vsyncpa [#allocation4], 0  ;;  %s14_s11 = sshll.u32 %s383_s0, 4  ;;  %s333_s12 = smov [#allocation2]   ;;  %s15_s11 = int_to_ptr.hbm [resolvable:$true] %s14_s11 }
   0x3   :  { %s16_s13 = sshll.u32 %s333_s12, 4  ;;  %s27_s16 = sshll.u32 %s384_s1, 4  ;;  %s17_s13 = int_to_ptr.vmem [resolvable:$true] %s16_s13  ;;  %s28_s16 = int_to_ptr.hbm [resolvable:$true] %s27_s16 }
   0x4   :  { %s334_s17 = smov 128   ;;  %s335_s18 = smov 8  }
   0x5   :  { %22 = dma.hbm_to_vmem [thread:$0]  %s15_s11, 256, %s17_s13, [#allocation3], %s334_s17, %s334_s17, %s335_s18  }
   0x6   :  { %s336_s19 = smov [#allocation5]  }
   0x7   :  { %s29_s20 = sshll.u32 %s336_s19, 4  ;;  %s30_s20 = int_to_ptr.vmem [resolvable:$true] %s29_s20 }
   0x8   :  { %35 = dma.hbm_to_vmem [thread:$0]  %s28_s16, 512, %s30_s20, [#allocation6], %s334_s17, %s334_s17, %s335_s18  }
   0x9   :  { %327 = dma.done.wait [#allocation3], 256  }
   0xa   :  { %328 = vsyncadd [#allocation3], 4294967040 }
   0xb   :  { %329 = dma.done.wait [#allocation6], 512  }
   0xc   :  { %330 = vsyncadd [#allocation6], 4294966784  ;;  %v49_v0 = vld [vmem:[#allocation5 + $0x18] sm:$0xff]  ;;  %v48_v1 = vld [vmem:[#allocation5 + $0x10] sm:$0xff]  ;;  %vm50_vm0 = vcmask 261120   ;;  %s337_s0 = smov 96  }
   0xd   :  { %69 = vmatpush.msra.mxu0 %v49_v0  ;;  %v47_v2 = vld [vmem:[#allocation5 + $0x8] sm:$0xff]  ;;  %v46_v3 = vld [vmem:[#allocation5] sm:$0xff]  ;;  %v44_v4 = vld [vmem:[#allocation2] sm:$0xff]  ;;  %s338_s1 = smov 112   ;;  %vm83_vm1 = vcmask 130048   ;;  %vm135_vm2 = vcmask 64512  }
   0xe   :  { %v45_v5 = vld [vmem:[#allocation2 + $0x8] sm:$0xff]  ;;  %s339_s21 = smov [#allocation7]   ;;  %s218_s25 = sshll.u32 %s385_s2, 4  ;;  %s219_s25 = int_to_ptr.hbm [resolvable:$true] %s218_s25 }
   0xf   :  { %70 = vmatpush.msra.mxu0 %v48_v1  ;;  %s216_s22 = sshll.u32 %s339_s21, 4  ;;  %s217_s22 = int_to_ptr.vmem [resolvable:$true] %s216_s22 }
  0x11   :  { %71 = vmatpush.msra.mxu0 %v47_v2 }
  0x13   :  { %72 = vmatpush.msra.mxu0 %v46_v3 }
  0x14   :  { %232 = vmatmul.msk.f32.vlgmr.msra.gmra.mxu0 %vm50_vm0, %v44_v4 }
  0x1c   :  { %233 = vmatmul.msk.f32.gmra.mxu0 %vm50_vm0, %v45_v5 }
  0x91   :  { %v74_v6 = vpop.f32.mrf.mxu0 }
  0x92   :  { %154 = vrot.lane.b32.xlu2 %v74_v6, %s337_s0  ;;  %81 = vrot.lane.b32.xlu0 %v74_v6, %s338_s1 }
  0x99   :  { %v77_v7 = vpop.f32.mrf.mxu0 }
  0x9a   :  { %180 = vrot.lane.b32.xlu2 %v77_v7, %s337_s0  ;;  %109 = vrot.lane.b32.xlu0 %v77_v7, %s338_s1 }
  0xec   :  { %v155_v8 = vpop.permute.xlu2 %154 }
  0xed   :  { %175 = vmatpush.msra.mxu3 %v155_v8 }
  0xf4   :  { %v181_v9 = vpop.permute.xlu2 %180 }
  0xf5   :  { %201 = vmatpush.msrb.mxu3 %v181_v9 }
 0x104   :  { %v82_v10 = vpop.permute.xlu0 %81 }
 0x105   :  { %234 = vmatpush.xpose.msk.msra.mxu1 %vm83_vm1, %v82_v10 }
 0x108   :  { %235 = vmatmul.msk.f32.vlgmr.msra.gmra.mxu1 %vm83_vm1, %v74_v6 }
 0x10c   :  { %v110_v11 = vpop.permute.xlu0 %109 }
 0x10d   :  { %236 = vmatpush.xpose.msk.msra.mxu2 %vm83_vm1, %v110_v11 }
 0x110   :  { %237 = vmatmul.msk.f32.vlgmr.msra.gmra.mxu2 %vm83_vm1, %v77_v7 }
 0x185   :  { %v105_v12 = vpop.f32.mrf.mxu1 }
 0x186   :  { %v136_v13 = vsel %vm135_vm2, %v105_v12, -inf }
 0x187   :  { %137 = vmax.xlane.f32.xlu1 %v136_v13 }
 0x193   :  { %v132_v14 = vpop.f32.mrf.mxu2 }
 0x194   :  { %v139_v15 = vsel %vm135_vm2, %v132_v14, -inf }
 0x195   :  { %140 = vmax.xlane.f32.xlu1 %v139_v15 }
 0x1fa   :  { %v138_v16 = vpop.xlane.xlu1 %137 }
 0x1fb   :  { %v142_v17 = vsub.f32 %v105_v12, %v138_v16 }
 0x1fd   :  { %v144_v18 = vmul.f32 1.442695, %v142_v17 }
 0x1ff   :  { %247 = vpow2.f32 %v144_v18 }
 0x205   :  { %v248_v19 = vpop.eup %247 }
 0x206   :  { %238 = vmatmul.msk.f32.vlgmr.msra.gmra.mxu3 %vm135_vm2, %v248_v19  ;;  %v148_v20 = vsel %vm135_vm2, %v248_v19, 0.0 }
 0x207   :  { %149 = vadd.xlane.f32.xlu0 %v148_v20 }
 0x208   :  { %v141_v21 = vpop.xlane.xlu1 %140 }
 0x209   :  { %v143_v22 = vsub.f32 %v132_v14, %v141_v21 }
 0x20b   :  { %v146_v23 = vmul.f32 1.442695, %v143_v22 }
 0x20d   :  { %249 = vpow2.f32 %v146_v23 }
 0x213   :  { %v250_v24 = vpop.eup %249 }
 0x214   :  { %239 = vmatmul.msk.f32.vlgmr.msrb.gmra.mxu3 %vm135_vm2, %v250_v24  ;;  %v151_v25 = vsel %vm135_vm2, %v250_v24, 0.0 }
 0x215   :  { %152 = vadd.xlane.f32.xlu1 %v151_v25 }
 0x27a   :  { %v150_v26 = vpop.xlane.xlu0 %149 }
 0x27b   :  { %251 = vrcp.f32 %v150_v26 }
 0x281   :  { %v252_v27 = vpop.eup %251 }
 0x288   :  { %v153_v30 = vpop.xlane.xlu1 %152 }
 0x289   :  { %v177_v28 = vpop.f32.mrf.mxu3  ;;  %253 = vrcp.f32 %v153_v30 }
 0x28a   :  { %v208_v29 = vmul.f32 %v252_v27, %v177_v28 }
 0x28c   :  { %210 = vst.msk [vmem:[#allocation7] sm:$0xff] %vm50_vm0, %v208_v29 }
 0x28f   :  { %v254_v31 = vpop.eup %253 }
 0x297   :  { %v203_v32 = vpop.f32.mrf.mxu3 }
 0x298   :  { %v209_v33 = vmul.f32 %v254_v31, %v203_v32 }
 0x29a   :  { %211 = vst.msk [vmem:[#allocation7 + $0x8] sm:$0xff] %vm50_vm0, %v209_v33 }
 0x29b   :  { %224 = dma.vmem_to_hbm [thread:$0]  %s217_s22, 256, %s219_s25, [#allocation4], %s334_s17, %s334_s17, %s335_s18  }
 0x29c   :  { %331 = dma.done.wait [#allocation4], 256  }
 0x29d   :  { %332 = vsyncadd [#allocation4], 4294967040 }
 0x29e   :  { %229 = vsyncpa [#allocation3], 1 }
 0x29f   :  { %230 = vsyncpa [#allocation6], 1 }
 0x2a0   :  { %231 = vsyncpa [#allocation4], 1 }

</bundles_post_ra>
